<compile_context>
chip_gen: v5e
topology: v5e:2x2
jax: 0.10.0
libtpu: 0.0.40
codegen_flags: <defaults>
</compile_context>

<pallas_src>
import jax
import jax.numpy as jnp
from jax.experimental import pallas as pl
from jax.experimental.pallas import tpu as pltpu


def _ffnn_kernel(x_ref, w1_ref, b1_ref, w2_ref, b2_ref, w3_ref, b3_ref, out_ref):
    """Fused 3-layer MLP, features-major / batch-on-lanes layout.

    x_ref:  [D_in, TB]    w1_ref: [H1, D_in]   b1_ref: [H1, 1]
    w2_ref: [H2, H1]      b2_ref: [H2, 1]
    w3_ref: [1,  H2]      b3_ref: [1, 1]
    out_ref: [1, TB]      (batch on the lane axis -> lane-dense store)
    """
    x = x_ref[...]                                                    # [D_in, TB] f32

    h1 = jnp.dot(w1_ref[...], x,
                 preferred_element_type=jnp.float32) + b1_ref[...]    # [H1, TB]
    h1 = jnp.maximum(h1, 0.0)

    h2 = jnp.dot(w2_ref[...], h1,
                 preferred_element_type=jnp.float32) + b2_ref[...]    # [H2, TB]
    h2 = jnp.maximum(h2, 0.0)

    out = jnp.dot(w3_ref[...], h2,
                  preferred_element_type=jnp.float32) + b3_ref[...]   # [1, TB]
    out_ref[...] = out.astype(out_ref.dtype)


def dense_ffnn_forward(params, x_cat, x_cont, *, block_b=512):
    """Inference forward pass of DenseFFNN.

    params: dict with
      'emb_tables': list of [n_cat_i, emb_dim_i] f32 tables
      'lin1'/'lin2'/'lin3': (W, b) with W of shape [out, in]
      'bn1'/'bn2'/'bn3': (gamma, beta, running_mean, running_var)
      'eps': batchnorm epsilon
    x_cat:  [B, n_cat_cols] int32
    x_cont: [B, n_cont] float32
    returns: [B, 1] float32
    """
    emb_tables = params["emb_tables"]
    W1, b1 = params["lin1"]
    W2, b2 = params["lin2"]
    W3, b3 = params["lin3"]
    g1, be1, m1, v1 = params["bn1"]
    g2, be2, m2, v2 = params["bn2"]
    g3, be3, m3, v3 = params["bn3"]
    eps = params.get("eps", 1e-5)

    B = x_cat.shape[0]
    n_emb = sum(int(t.shape[1]) for t in emb_tables)
    n_cont = x_cont.shape[1]
    d_in = n_emb + n_cont
    H1, H2 = int(W1.shape[0]), int(W2.shape[0])

    # ---- Fold inference-mode BatchNorms into the adjacent Linear layers ------
    # bn(x) = x * s + t  with  s = gamma / sqrt(var + eps),  t = beta - mean * s
    s1 = g1 * jax.lax.rsqrt(v1 + eps); t1 = be1 - m1 * s1     # bn1 (x_cont, before lin1)
    s2 = g2 * jax.lax.rsqrt(v2 + eps); t2 = be2 - m2 * s2     # bn2 (before lin2)
    s3 = g3 * jax.lax.rsqrt(v3 + eps); t3 = be3 - m3 * s3     # bn3 (before lin3)

    W1c = W1[:, n_emb:]                                        # columns hitting x_cont
    W1_eff = jnp.concatenate([W1[:, :n_emb], W1c * s1[None, :]], axis=1)   # [H1, D_in]
    b1_eff = b1 + W1c @ t1
    W2_eff = W2 * s2[None, :]
    b2_eff = b2 + W2 @ t2
    W3_eff = W3 * s3[None, :]
    b3_eff = b3 + W3 @ t3

    # ---- Embedding gathers + concat with raw continuous features ------------
    # TODO(synk): gather stays in XLA (tables are tiny, the fused MLP matmuls
    # dominate); could be moved in-kernel with scalar prefetch if tables grow.
    x_emb = jnp.concatenate([tbl[x_cat[:, i]] for i, tbl in enumerate(emb_tables)],
                            axis=1)                                        # [B, n_emb]
    x_in = jnp.concatenate([x_emb, x_cont], axis=1)                        # [B, D_in]

    # ---- Transpose to [D_in, B] (batch on lanes) and pad the batch ----------
    if B <= block_b:
        tb, b_pad = B, B
    else:
        tb = block_b                                    # multiple of 128
        b_pad = pl.cdiv(B, tb) * tb
    x_t = x_in.T                                        # [D_in, B]
    if b_pad != B:
        x_t = jnp.pad(x_t, ((0, 0), (0, b_pad - B)))

    out = pl.pallas_call(
        _ffnn_kernel,
        out_shape=jax.ShapeDtypeStruct((1, b_pad), jnp.float32),
        grid=(b_pad // tb,),
        in_specs=[
            pl.BlockSpec((d_in, tb), lambda g: (0, g)),   # activations: tiled over batch
            pl.BlockSpec((H1, d_in), lambda g: (0, 0)),   # weights/biases: VMEM-resident
            pl.BlockSpec((H1, 1), lambda g: (0, 0)),
            pl.BlockSpec((H2, H1), lambda g: (0, 0)),
            pl.BlockSpec((H2, 1), lambda g: (0, 0)),
            pl.BlockSpec((1, H2), lambda g: (0, 0)),
            pl.BlockSpec((1, 1), lambda g: (0, 0)),
        ],
        out_specs=pl.BlockSpec((1, tb), lambda g: (0, g)),  # lane-dense output row
        compiler_params=pltpu.CompilerParams(
            dimension_semantics=("parallel",)),
    )(x_t, W1_eff, b1_eff[:, None], W2_eff, b2_eff[:, None],
      W3_eff, b3_eff[:, None])

    return out[0, :B][:, None]                             # [B, 1], like the PyTorch module


if __name__ == "__main__":
    # Small, deterministic example consistent with the module.
    embedding_sizes = [(10, 5), (8, 4), (6, 3)]   # (categories, emb_dim) -> n_emb = 12
    n_cont = 4
    batch = 8
    eps = 1e-5

    keys = iter(jax.random.split(jax.random.PRNGKey(0), 20))

    emb_tables = [jax.random.normal(next(keys), (c, d), jnp.float32) * 0.1
                  for c, d in embedding_sizes]
    n_emb = sum(d for _, d in embedding_sizes)
    d_in = n_emb + n_cont

    def lin_init(k, out_d, in_d):
        k1, k2 = jax.random.split(k)
        bound = 1.0 / float(jnp.sqrt(in_d))
        W = jax.random.uniform(k1, (out_d, in_d), jnp.float32, -bound, bound)
        b = jax.random.uniform(k2, (out_d,), jnp.float32, -bound, bound)
        return W, b

    W1, b1 = lin_init(next(keys), 300, d_in)
    W2, b2 = lin_init(next(keys), 100, 300)
    W3, b3 = lin_init(next(keys), 1, 100)

    def bn_init(k, d):
        k1, k2, k3, k4 = jax.random.split(k, 4)
        gamma = 1.0 + 0.1 * jax.random.normal(k1, (d,), jnp.float32)
        beta = 0.1 * jax.random.normal(k2, (d,), jnp.float32)
        mean = 0.1 * jax.random.normal(k3, (d,), jnp.float32)
        var = jax.random.uniform(k4, (d,), jnp.float32, 0.5, 1.5)
        return gamma, beta, mean, var

    bn1 = bn_init(next(keys), n_cont)
    bn2 = bn_init(next(keys), 300)
    bn3 = bn_init(next(keys), 100)

    x_cat = jnp.stack([jax.random.randint(next(keys), (batch,), 0, c, jnp.int32)
                       for c, _ in embedding_sizes], axis=1)          # [B, 3]
    x_cont = jax.random.normal(next(keys), (batch, n_cont), jnp.float32)

    params = dict(emb_tables=emb_tables, lin1=(W1, b1), lin2=(W2, b2),
                  lin3=(W3, b3), bn1=bn1, bn2=bn2, bn3=bn3, eps=eps)

    out = dense_ffnn_forward(params, x_cat, x_cont)
    out = jax.block_until_ready(out)

    # ---- Pure-JAX reference (inference-mode semantics of the PyTorch module) ----
    def bn_apply(x, p):
        g, be, m, v = p
        return (x - m) * jax.lax.rsqrt(v + eps) * g + be

    x_emb = jnp.concatenate([t[x_cat[:, i]] for i, t in enumerate(emb_tables)], axis=1)
    h = jnp.concatenate([x_emb, bn_apply(x_cont, bn1)], axis=1)
    h = jax.nn.relu(h @ W1.T + b1)
    h = bn_apply(h, bn2)
    h = jax.nn.relu(h @ W2.T + b2)
    h = bn_apply(h, bn3)
    ref = h @ W3.T + b3                                                # [B, 1]

    assert out.shape == (batch, 1), out.shape
    # Tolerance covers the MXU's default f32 contraction precision (bf16 passes)
    # on both the kernel and the XLA reference matmuls.
    assert jnp.allclose(out, ref, atol=5e-2, rtol=5e-2), (
        float(jnp.max(jnp.abs(out - ref))))

    print("KERNEL_OK")
</pallas_src>

<mosaic_0001>
module attributes {stable_mosaic.version = 11 : i64} {
  func.func @_ffnn_kernel(%arg0: i32, %arg1: memref<16x8xf32, #tpu.memory_space<vmem>>, %arg2: memref<300x16xf32, #tpu.memory_space<vmem>>, %arg3: memref<300x1xf32, #tpu.memory_space<vmem>>, %arg4: memref<100x300xf32, #tpu.memory_space<vmem>>, %arg5: memref<100x1xf32, #tpu.memory_space<vmem>>, %arg6: memref<1x100xf32, #tpu.memory_space<vmem>>, %arg7: memref<1x1xf32, #tpu.memory_space<vmem>>, %arg8: memref<1x8xf32, #tpu.memory_space<vmem>>) attributes {dimension_semantics = [#tpu.dimension_semantics<parallel>], iteration_bounds = array<i64: 1>, scalar_prefetch = 0 : i64, scratch_operands = 0 : i64, tpu.core_type = #tpu.core_type<tc>, window_params = [{transform_indices = @transform_0, window_bounds = array<i64: 16, 8>}, {pipeline_mode = #tpu.pipeline_mode<synchronous>, transform_indices = @transform_1, window_bounds = array<i64: 300, 16>}, {pipeline_mode = #tpu.pipeline_mode<synchronous>, transform_indices = @transform_2, window_bounds = array<i64: 300, 1>}, {pipeline_mode = #tpu.pipeline_mode<synchronous>, transform_indices = @transform_3, window_bounds = array<i64: 100, 300>}, {pipeline_mode = #tpu.pipeline_mode<synchronous>, transform_indices = @transform_4, window_bounds = array<i64: 100, 1>}, {pipeline_mode = #tpu.pipeline_mode<synchronous>, transform_indices = @transform_5, window_bounds = array<i64: 1, 100>}, {pipeline_mode = #tpu.pipeline_mode<synchronous>, transform_indices = @transform_6, window_bounds = array<i64: 1, 1>}, {transform_indices = @transform_7, window_bounds = array<i64: 1, 8>}]} {
    %c0 = arith.constant 0 : index
    %c0_0 = arith.constant 0 : index
    %0 = vector.load %arg1[%c0, %c0_0] : memref<16x8xf32, #tpu.memory_space<vmem>>, vector<16x8xf32>
    %c0_1 = arith.constant 0 : index
    %c0_2 = arith.constant 0 : index
    %1 = vector.load %arg2[%c0_1, %c0_2] : memref<300x16xf32, #tpu.memory_space<vmem>>, vector<300x16xf32>
    %cst = arith.constant dense<0.000000e+00> : vector<300x8xf32>
    %2 = tpu.matmul %1, %0, %cst {dimension_numbers = #tpu.dot_dimension_numbers<[1], [0], [0], [1], [0, 0, 1, 1], [], []>} : vector<300x16xf32>, vector<16x8xf32>, vector<300x8xf32> -> vector<300x8xf32>
    %c0_3 = arith.constant 0 : index
    %c0_4 = arith.constant 0 : index
    %3 = vector.load %arg3[%c0_3, %c0_4] : memref<300x1xf32, #tpu.memory_space<vmem>>, vector<300x1xf32>
    %4 = vector.broadcast %3 : vector<300x1xf32> to vector<300x8xf32>
    %5 = arith.addf %2, %4 : vector<300x8xf32>
    %cst_5 = arith.constant 0.000000e+00 : f32
    %6 = vector.broadcast %cst_5 : f32 to vector<300x8xf32>
    %7 = arith.maximumf %5, %6 : vector<300x8xf32>
    %c0_6 = arith.constant 0 : index
    %c0_7 = arith.constant 0 : index
    %8 = vector.load %arg4[%c0_6, %c0_7] : memref<100x300xf32, #tpu.memory_space<vmem>>, vector<100x300xf32>
    %cst_8 = arith.constant dense<0.000000e+00> : vector<100x8xf32>
    %9 = tpu.matmul %8, %7, %cst_8 {dimension_numbers = #tpu.dot_dimension_numbers<[1], [0], [0], [1], [0, 0, 1, 1], [], []>} : vector<100x300xf32>, vector<300x8xf32>, vector<100x8xf32> -> vector<100x8xf32>
    %c0_9 = arith.constant 0 : index
    %c0_10 = arith.constant 0 : index
    %10 = vector.load %arg5[%c0_9, %c0_10] : memref<100x1xf32, #tpu.memory_space<vmem>>, vector<100x1xf32>
    %11 = vector.broadcast %10 : vector<100x1xf32> to vector<100x8xf32>
    %12 = arith.addf %9, %11 : vector<100x8xf32>
    %cst_11 = arith.constant 0.000000e+00 : f32
    %13 = vector.broadcast %cst_11 : f32 to vector<100x8xf32>
    %14 = arith.maximumf %12, %13 : vector<100x8xf32>
    %c0_12 = arith.constant 0 : index
    %c0_13 = arith.constant 0 : index
    %15 = vector.load %arg6[%c0_12, %c0_13] : memref<1x100xf32, #tpu.memory_space<vmem>>, vector<1x100xf32>
    %cst_14 = arith.constant dense<0.000000e+00> : vector<1x8xf32>
    %16 = tpu.matmul %15, %14, %cst_14 {dimension_numbers = #tpu.dot_dimension_numbers<[1], [0], [0], [1], [0, 0, 1, 1], [], []>} : vector<1x100xf32>, vector<100x8xf32>, vector<1x8xf32> -> vector<1x8xf32>
    %c0_15 = arith.constant 0 : index
    %c0_16 = arith.constant 0 : index
    %17 = vector.load %arg7[%c0_15, %c0_16] : memref<1x1xf32, #tpu.memory_space<vmem>>, vector<1x1xf32>
    %18 = vector.broadcast %17 : vector<1x1xf32> to vector<1x8xf32>
    %19 = arith.addf %16, %18 : vector<1x8xf32>
    %c0_17 = arith.constant 0 : index
    %c0_18 = arith.constant 0 : index
    %20 = vector.load %arg8[%c0_17, %c0_18] : memref<1x8xf32, #tpu.memory_space<vmem>>, vector<1x8xf32>
    tpu.vector_store %arg8[%c0_17, %c0_18], %19 {strides = array<i32>} : memref<1x8xf32, #tpu.memory_space<vmem>>, vector<1x8xf32>,
    return
  }
  func.func @transform_0(%arg0: i32) -> (i32, i32) {
    %c0_i32 = arith.constant 0 : i32
    %c0_i32_0 = arith.constant 0 : i32
    return %c0_i32, %arg0 : i32, i32
  }
  func.func @transform_1(%arg0: i32) -> (i32, i32) {
    %c0_i32 = arith.constant 0 : i32
    %c0_i32_0 = arith.constant 0 : i32
    %c0_i32_1 = arith.constant 0 : i32
    return %c0_i32, %c0_i32_0 : i32, i32
  }
  func.func @transform_2(%arg0: i32) -> (i32, i32) {
    %c0_i32 = arith.constant 0 : i32
    %c0_i32_0 = arith.constant 0 : i32
    %c0_i32_1 = arith.constant 0 : i32
    return %c0_i32, %c0_i32_0 : i32, i32
  }
  func.func @transform_3(%arg0: i32) -> (i32, i32) {
    %c0_i32 = arith.constant 0 : i32
    %c0_i32_0 = arith.constant 0 : i32
    %c0_i32_1 = arith.constant 0 : i32
    return %c0_i32, %c0_i32_0 : i32, i32
  }
  func.func @transform_4(%arg0: i32) -> (i32, i32) {
    %c0_i32 = arith.constant 0 : i32
    %c0_i32_0 = arith.constant 0 : i32
    %c0_i32_1 = arith.constant 0 : i32
    return %c0_i32, %c0_i32_0 : i32, i32
  }
  func.func @transform_5(%arg0: i32) -> (i32, i32) {
    %c0_i32 = arith.constant 0 : i32
    %c0_i32_0 = arith.constant 0 : i32
    %c0_i32_1 = arith.constant 0 : i32
    return %c0_i32, %c0_i32_0 : i32, i32
  }
  func.func @transform_6(%arg0: i32) -> (i32, i32) {
    %c0_i32 = arith.constant 0 : i32
    %c0_i32_0 = arith.constant 0 : i32
    %c0_i32_1 = arith.constant 0 : i32
    return %c0_i32, %c0_i32_0 : i32, i32
  }
  func.func @transform_7(%arg0: i32) -> (i32, i32) {
    %c0_i32 = arith.constant 0 : i32
    %c0_i32_0 = arith.constant 0 : i32
    return %c0_i32, %arg0 : i32, i32
  }
}

</mosaic_0001>

<bundles_post_ra>
// kernel: tpu_custom_call.1
= control target key start
LH: loop header
LB: loop body
LE: loop exit
PB: predicated region body
PF: predicated region fallthrough
CT: control target
= control target key end

     0   :  { %s1691_s0 = inlined_call_operand.vmem [shape: f32[16,8], index: 0, kind: input, shape index: {}]   ;;  %s1692_s1 = inlined_call_operand.vmem [shape: f32[300,16], index: 1, kind: input, shape index: {}]   ;;  %s1693_s2 = inlined_call_operand.vmem [shape: f32[300,1], index: 2, kind: input, shape index: {}]   ;;  %s1694_s3 = inlined_call_operand.vmem [shape: f32[100,300], index: 3, kind: input, shape index: {}]   ;;  %s1695_s4 = inlined_call_operand.vmem [shape: f32[100,1], index: 4, kind: input, shape index: {}]   ;;  %s1696_s5 = inlined_call_operand.vmem [shape: f32[1,100], index: 5, kind: input, shape index: {}]   ;;  %s1697_s6 = inlined_call_operand.<no memory space> [shape: f32[1,1], index: 6, kind: input, shape index: {}]   ;;  %s1698_s7 = inlined_call_operand.hbm [shape: f32[1,8], index: 7, kind: output, shape index: {}]  }
   0x1   :  { %v12_v0 = vstv %s1697_s6 }
   0x2   :  { %13 = vst [vmem:[#allocation2] sm:$0x1] %v12_v0 }
   0x3   :  { %v30_v1 = vld [vmem:[%s1691_s0 + $0x8] sm:$0xff]  ;;  %v100_v2 = vld [vmem:[%s1693_s2 + $0xf8] sm:$0xff]  ;;  %v1065_v4 = vmov 0   ;;  %v83_v5 = vld [vmem:[%s1693_s2 + $0x70] sm:$0xff]  ;;  %vm297_vm0 = vcmask 130048  }
   0x4   :  { %v84_v3 = vld [vmem:[%s1693_s2 + $0x78] sm:$0xff]  ;;  %1038 = vset.pattern.permute.xlu2 %v1065_v4  ;;  %1037 = vset.pattern.permute.xlu1 %v1065_v4  ;;  %v29_v6 = vld [vmem:[%s1691_s0] sm:$0xff]  ;;  %v53_v8 = vld [vmem:[%s1692_s1 + $0xb0] sm:$0xff] }
   0x5   :  { %1036 = vset.pattern.permute.xlu0 %v1065_v4  ;;  %426 = vmatpush.msra.mxu0 %v30_v1  ;;  %v31_v7 = vld [vmem:[%s1692_s1] sm:$0xff]  ;;  %v62_v9 = vld [vmem:[%s1692_s1 + $0xf8] sm:$0xff]  ;;  %v99_v10 = vld [vmem:[%s1693_s2 + $0xf0] sm:$0xff] }
   0x6   :  { %264 = vperm.xlu0 %1036, %v100_v2   ;;  %184 = vperm.xlu1 %1037, %v84_v3   ;;  %v98_v11 = vld [vmem:[%s1693_s2 + $0xe8] sm:$0xff]  ;;  %v97_v12 = vld [vmem:[%s1693_s2 + $0xe0] sm:$0xff] }
   0x7   :  { %179 = vperm.xlu2 %1038, %v83_v5   ;;  %427 = vmatpush.msra.mxu0 %v29_v6  ;;  %v32_v13 = vld [vmem:[%s1692_s1 + $0x8] sm:$0xff] }
   0x8   :  { %976 = vmatmul.msk.f32.vlgmr.msra.gmra.mxu0 %vm297_vm0, %v31_v7  ;;  %1030 = vmatpush.msra.mxu1 %v30_v1 }
   0x9   :  { %1031 = vmatpush.msra.mxu3 %v30_v1 }
   0xa   :  { %1032 = vmatpush.msra.mxu1 %v29_v6 }
   0xb   :  { %998 = vmatmul.msk.f32.vlgmr.msra.gmra.mxu1 %vm297_vm0, %v53_v8  ;;  %1033 = vmatpush.msra.mxu3 %v29_v6 }
   0xc   :  { %1007 = vmatmul.msk.f32.vlgmr.msra.gmra.mxu3 %vm297_vm0, %v62_v9 }
   0xd   :  { %14 = vsyncpa [#allocation4], 0  ;;  %v54_v14 = vld [vmem:[%s1692_s1 + $0xb8] sm:$0xff]  ;;  %v63_v15 = vld [vmem:[%s1692_s1 + $0x100] sm:$0xff]  ;;  %vm738_vm1 = vcmask 1043456   ;;  %vm698_vm2 = vcmask 359424  }
   0xe   :  { %259 = vperm.xlu0 %1036, %v99_v10   ;;  %254 = vperm.xlu1 %1037, %v98_v11   ;;  %v96_v16 = vld [vmem:[%s1693_s2 + $0xd8] sm:$0xff]  ;;  %v82_v17 = vld [vmem:[%s1693_s2 + $0x68] sm:$0xff]  ;;  %v81_v18 = vld [vmem:[%s1693_s2 + $0x60] sm:$0xff]  ;;  %vm931_vm3 = vcmask 818176   ;;  %s1066_s25 = smov [#allocation3]   ;;  %s967_s29 = sshll.u32 %s1698_s7, 4  ;;  %s968_s29 = int_to_ptr.hbm [resolvable:$true] %s967_s29 }
   0xf   :  { %249 = vperm.xlu2 %1038, %v97_v12   ;;  %v33_v19 = vld [vmem:[%s1692_s1 + $0x10] sm:$0xff]  ;;  %v55_v20 = vld [vmem:[%s1692_s1 + $0xc0] sm:$0xff]  ;;  %v64_v21 = vld [vmem:[%s1692_s1 + $0x108] sm:$0xff]  ;;  %s965_s26 = sshll.u32 %s1066_s25, 4  ;;  %vm958_vm4 = vcmask 57344   ;;  %s966_s26 = int_to_ptr.vmem [resolvable:$true] %s965_s26 }
  0x10   :  { %977 = vmatmul.msk.f32.gmra.mxu0 %vm297_vm0, %v32_v13  ;;  %v95_v22 = vld [vmem:[%s1693_s2 + $0xd0] sm:$0xff]  ;;  %v80_v23 = vld [vmem:[%s1693_s2 + $0x58] sm:$0xff]  ;;  %v94_v24 = vld [vmem:[%s1693_s2 + $0xc8] sm:$0xff] }
  0x11   :  { %v34_v25 = vld [vmem:[%s1692_s1 + $0x18] sm:$0xff]  ;;  %v56_v26 = vld [vmem:[%s1692_s1 + $0xc8] sm:$0xff]  ;;  %v65_v27 = vld [vmem:[%s1692_s1 + $0x110] sm:$0xff] }
  0x12   :  { %v93_v28 = vld [vmem:[%s1693_s2 + $0xc0] sm:$0xff]  ;;  %v79_v29 = vld [vmem:[%s1693_s2 + $0x50] sm:$0xff]  ;;  %v78_v30 = vld [vmem:[%s1693_s2 + $0x48] sm:$0xff] }
  0x13   :  { %999 = vmatmul.msk.f32.gmra.mxu1 %vm297_vm0, %v54_v14  ;;  %v35_v31 = vld [vmem:[%s1692_s1 + $0x20] sm:$0xff]  ;;  %v57_v32 = vld [vmem:[%s1692_s1 + $0xd0] sm:$0xff]  ;;  %v66_v33 = vld [vmem:[%s1692_s1 + $0x118] sm:$0xff] }
  0x14   :  { %1008 = vmatmul.msk.f32.gmra.mxu3 %vm297_vm0, %v63_v15  ;;  %v92_v34 = vld [vmem:[%s1693_s2 + $0xb8] sm:$0xff]  ;;  %v77_v35 = vld [vmem:[%s1693_s2 + $0x40] sm:$0xff]  ;;  %v91_v36 = vld [vmem:[%s1693_s2 + $0xb0] sm:$0xff] }
  0x15   :  { %v36_v37 = vld [vmem:[%s1692_s1 + $0x28] sm:$0xff]  ;;  %v58_v38 = vld [vmem:[%s1692_s1 + $0xd8] sm:$0xff]  ;;  %v67_v39 = vld [vmem:[%s1692_s1 + $0x120] sm:$0xff] }
  0x16   :  { %244 = vperm.xlu1 %1037, %v96_v16   ;;  %174 = vperm.xlu0 %1036, %v82_v17   ;;  %v90_v40 = vld [vmem:[%s1693_s2 + $0xa8] sm:$0xff]  ;;  %v76_v41 = vld [vmem:[%s1693_s2 + $0x38] sm:$0xff]  ;;  %v75_v42 = vld [vmem:[%s1693_s2 + $0x30] sm:$0xff] }
  0x17   :  { %169 = vperm.xlu2 %1038, %v81_v18   ;;  %v37_v43 = vld [vmem:[%s1692_s1 + $0x30] sm:$0xff]  ;;  %v59_v44 = vld [vmem:[%s1692_s1 + $0xe0] sm:$0xff]  ;;  %v68_v45 = vld [vmem:[%s1692_s1 + $0x128] sm:$0xf] }
  0x18   :  { %978 = vmatmul.msk.f32.gmra.mxu0 %vm297_vm0, %v33_v19  ;;  %v106_v46 = vld [vmem:[%s1693_s2 + $0x128] sm:$0xf]  ;;  %v89_v47 = vld [vmem:[%s1693_s2 + $0xa0] sm:$0xff]  ;;  %v38_v49 = vld [vmem:[%s1692_s1 + $0x38] sm:$0xff] }
  0x19   :  { %v74_v48 = vld [vmem:[%s1693_s2 + $0x28] sm:$0xff]  ;;  %v105_v51 = vld [vmem:[%s1693_s2 + $0x120] sm:$0xff]  ;;  %v88_v52 = vld [vmem:[%s1693_s2 + $0x98] sm:$0xff] }
  0x1a   :  { %v60_v50 = vld [vmem:[%s1692_s1 + $0xe8] sm:$0xff]  ;;  %v73_v53 = vld [vmem:[%s1693_s2 + $0x20] sm:$0xff]  ;;  %v61_v55 = vld [vmem:[%s1692_s1 + $0xf0] sm:$0xff] }
  0x1b   :  { %1000 = vmatmul.msk.f32.gmra.mxu1 %vm297_vm0, %v55_v20  ;;  %v39_v54 = vld [vmem:[%s1692_s1 + $0x40] sm:$0xff]  ;;  %v104_v56 = vld [vmem:[%s1693_s2 + $0x118] sm:$0xff]  ;;  %v87_v57 = vld [vmem:[%s1693_s2 + $0x90] sm:$0xff] }
  0x1c   :  { %1009 = vmatmul.msk.f32.gmra.mxu3 %vm297_vm0, %v64_v21  ;;  %v72_v58 = vld [vmem:[%s1693_s2 + $0x18] sm:$0xff]  ;;  %v40_v59 = vld [vmem:[%s1692_s1 + $0x48] sm:$0xff]  ;;  %v103_v60 = vld [vmem:[%s1693_s2 + $0x110] sm:$0xff] }
  0x1d   :  { %v86_v61 = vld [vmem:[%s1693_s2 + $0x88] sm:$0xff]  ;;  %v71_v62 = vld [vmem:[%s1693_s2 + $0x10] sm:$0xff]  ;;  %v85_v1 = vld [vmem:[%s1693_s2 + $0x80] sm:$0xff] }
  0x1e   :  { %239 = vperm.xlu0 %1036, %v95_v22   ;;  %164 = vperm.xlu1 %1037, %v80_v23   ;;  %v41_v63 = vld [vmem:[%s1692_s1 + $0x50] sm:$0xff]  ;;  %v102_v0 = vld [vmem:[%s1693_s2 + $0x108] sm:$0xff]  ;;  %v42_v3 = vld [vmem:[%s1692_s1 + $0x58] sm:$0xff] }
  0x1f   :  { %234 = vperm.xlu2 %1038, %v94_v24   ;;  %v70_v2 = vld [vmem:[%s1693_s2 + $0x8] sm:$0xff]  ;;  %v101_v4 = vld [vmem:[%s1693_s2 + $0x100] sm:$0xff]  ;;  %v631_v8 = vld [vmem:[%s1695_s4 + $0x58] sm:$0xff] }
  0x20   :  { %979 = vmatmul.msk.f32.gmra.mxu0 %vm297_vm0, %v34_v25  ;;  %v69_v5 = vld [vmem:[%s1693_s2] sm:$0xff]  ;;  %v630_v9 = vld [vmem:[%s1695_s4 + $0x50] sm:$0xff]  ;;  %v629_v10 = vld [vmem:[%s1695_s4 + $0x48] sm:$0xff] }
  0x21   :  { %v632_v6 = vld [vmem:[%s1695_s4 + $0x60] sm:$0xf]  ;;  %v44_v11 = vld [vmem:[%s1692_s1 + $0x68] sm:$0xff]  ;;  %v627_v13 = vld [vmem:[%s1695_s4 + $0x38] sm:$0xff] }
  0x22   :  { %v43_v7 = vld [vmem:[%s1692_s1 + $0x60] sm:$0xff]  ;;  %v626_v14 = vld [vmem:[%s1695_s4 + $0x30] sm:$0xff]  ;;  %v625_v18 = vld [vmem:[%s1695_s4 + $0x28] sm:$0xff] }
  0x23   :  { %1001 = vmatmul.msk.f32.gmra.mxu1 %vm297_vm0, %v56_v26  ;;  %v628_v12 = vld [vmem:[%s1695_s4 + $0x40] sm:$0xff]  ;;  %v45_v15 = vld [vmem:[%s1692_s1 + $0x70] sm:$0xff]  ;;  %v623_v20 = vld [vmem:[%s1695_s4 + $0x18] sm:$0xff] }
  0x24   :  { %1010 = vmatmul.msk.f32.gmra.mxu3 %vm297_vm0, %v65_v27  ;;  %v624_v19 = vld [vmem:[%s1695_s4 + $0x20] sm:$0xff]  ;;  %v46_v21 = vld [vmem:[%s1692_s1 + $0x78] sm:$0xff]  ;;  %v622_v24 = vld [vmem:[%s1695_s4 + $0x10] sm:$0xff] }
  0x25   :  { %v621_v25 = vld [vmem:[%s1695_s4 + $0x8] sm:$0xff]  ;;  %v620_v26 = vld [vmem:[%s1695_s4] sm:$0xff] }
  0x26   :  { %229 = vperm.xlu1 %1037, %v93_v28   ;;  %159 = vperm.xlu0 %1036, %v79_v29   ;;  %v47_v28 = vld [vmem:[%s1692_s1 + $0x80] sm:$0xff] }
  0x27   :  { %154 = vperm.xlu2 %1038, %v78_v30  }
  0x28   :  { %980 = vmatmul.msk.f32.gmra.mxu0 %vm297_vm0, %v35_v31 }
  0x2b   :  { %1002 = vmatmul.msk.f32.gmra.mxu1 %vm297_vm0, %v57_v32  ;;  %v924_v32 = vld [vmem:[#allocation2] sm:$0x1] }
  0x2c   :  { %1011 = vmatmul.msk.f32.gmra.mxu3 %vm297_vm0, %v66_v33 }
  0x2e   :  { %224 = vperm.xlu0 %1036, %v92_v34   ;;  %149 = vperm.xlu1 %1037, %v77_v35   ;;  %v48_v34 = vld [vmem:[%s1692_s1 + $0x88] sm:$0xff] }
  0x2f   :  { %219 = vperm.xlu2 %1038, %v91_v36  }
  0x30   :  { %981 = vmatmul.msk.f32.gmra.mxu0 %vm297_vm0, %v36_v37 }
  0x33   :  { %1003 = vmatmul.msk.f32.gmra.mxu1 %vm297_vm0, %v58_v38 }
  0x34   :  { %1012 = vmatmul.msk.f32.gmra.mxu3 %vm297_vm0, %v67_v39 }
  0x36   :  { %214 = vperm.xlu1 %1037, %v90_v40   ;;  %144 = vperm.xlu0 %1036, %v76_v41   ;;  %v49_v40 = vld [vmem:[%s1692_s1 + $0x90] sm:$0xff] }
  0x37   :  { %139 = vperm.xlu2 %1038, %v75_v42  }
  0x38   :  { %982 = vmatmul.msk.f32.gmra.mxu0 %vm297_vm0, %v37_v43 }
  0x3b   :  { %1004 = vmatmul.msk.f32.gmra.mxu1 %vm297_vm0, %v59_v44 }
  0x3c   :  { %1013 = vmatmul.msk.f32.gmra.mxu3 %vm297_vm0, %v68_v45 }
  0x3e   :  { %294 = vperm.xlu1 %1037, %v106_v46   ;;  %209 = vperm.xlu0 %1036, %v89_v47   ;;  %v50_v46 = vld [vmem:[%s1692_s1 + $0x98] sm:$0xff] }
  0x3f   :  { %134 = vperm.xlu2 %1038, %v74_v48  }
  0x40   :  { %983 = vmatmul.msk.f32.gmra.mxu0 %vm297_vm0, %v38_v49 }
  0x43   :  { %1005 = vmatmul.msk.f32.gmra.mxu1 %vm297_vm0, %v60_v50 }
  0x46   :  { %289 = vperm.xlu1 %1037, %v105_v51   ;;  %204 = vperm.xlu0 %1036, %v88_v52  }
  0x47   :  { %129 = vperm.xlu2 %1038, %v73_v53   ;;  %v51_v53 = vld [vmem:[%s1692_s1 + $0xa0] sm:$0xff] }
  0x48   :  { %984 = vmatmul.msk.f32.gmra.mxu0 %vm297_vm0, %v39_v54 }
  0x4b   :  { %1006 = vmatmul.msk.f32.gmra.mxu1 %vm297_vm0, %v61_v55 }
  0x4e   :  { %284 = vperm.xlu1 %1037, %v104_v56   ;;  %199 = vperm.xlu0 %1036, %v87_v57  }
  0x4f   :  { %124 = vperm.xlu2 %1038, %v72_v58  }
  0x50   :  { %985 = vmatmul.msk.f32.gmra.mxu0 %vm297_vm0, %v40_v59 }
  0x56   :  { %279 = vperm.xlu1 %1037, %v103_v60   ;;  %194 = vperm.xlu0 %1036, %v86_v61   ;;  %v52_v61 = vld [vmem:[%s1692_s1 + $0xa8] sm:$0xff] }
  0x57   :  { %119 = vperm.xlu2 %1038, %v71_v62  }
  0x58   :  { %986 = vmatmul.msk.f32.gmra.mxu0 %vm297_vm0, %v41_v63 }
  0x5e   :  { %274 = vperm.xlu1 %1037, %v102_v0   ;;  %189 = vperm.xlu0 %1036, %v85_v1  }
  0x5f   :  { %114 = vperm.xlu2 %1038, %v70_v2  }
  0x60   :  { %987 = vmatmul.msk.f32.gmra.mxu0 %vm297_vm0, %v42_v3 }
  0x61   :  { %v1451_v51 = vpop.permute.xlu2 %179 }
  0x66   :  { %269 = vperm.xlu0 %1036, %v101_v4   ;;  %109 = vperm.xlu1 %1037, %v69_v5  }
  0x67   :  { %695 = vperm.xlu2 %1038, %v632_v6  }
  0x68   :  { %988 = vmatmul.msk.f32.gmra.mxu0 %vm297_vm0, %v43_v7 }
  0x69   :  { %v250_v59 = vpop.permute.xlu2 %249 }
  0x6e   :  { %690 = vperm.xlu0 %1036, %v631_v8   ;;  %685 = vperm.xlu1 %1037, %v630_v9  }
  0x6f   :  { %680 = vperm.xlu2 %1038, %v629_v10  }
  0x70   :  { %989 = vmatmul.msk.f32.gmra.mxu0 %vm297_vm0, %v44_v11 }
  0x71   :  { %v1471_v4 = vpop.permute.xlu2 %169 }
  0x76   :  { %675 = vperm.xlu0 %1036, %v628_v12   ;;  %670 = vperm.xlu1 %1037, %v627_v13  }
  0x77   :  { %665 = vperm.xlu2 %1038, %v626_v14  }
  0x78   :  { %v265_v16 = vpop.permute.xlu0 %264  ;;  %v1374_v17 = vpop.permute.xlu1 %184  ;;  %990 = vmatmul.msk.f32.gmra.mxu0 %vm297_vm0, %v45_v15 }
  0x7e   :  { %660 = vperm.xlu0 %1036, %v625_v18   ;;  %655 = vperm.xlu1 %1037, %v624_v19  }
  0x7f   :  { %650 = vperm.xlu2 %1038, %v623_v20  }
  0x80   :  { %v1389_v22 = vpop.permute.xlu0 %259  ;;  %v1391_v23 = vpop.permute.xlu1 %254  ;;  %991 = vmatmul.msk.f32.gmra.mxu0 %vm297_vm0, %v46_v21 }
  0x85   :  { %v1403_v27 = vpop.f32.mrf.mxu0 }
  0x86   :  { %645 = vperm.xlu0 %1036, %v622_v24   ;;  %640 = vperm.xlu1 %1037, %v621_v25  }
  0x87   :  { %635 = vperm.xlu2 %1038, %v620_v26  }
  0x88   :  { %v1408_v29 = vpop.permute.xlu1 %244  ;;  %v1410_v30 = vpop.permute.xlu0 %174  ;;  %992 = vmatmul.msk.f32.gmra.mxu0 %vm297_vm0, %v47_v28 }
  0x89   :  { %v1413_v31 = vpop.f32.mrf.mxu1 }
  0x8d   :  { %v1415_v33 = vpop.f32.mrf.mxu0 }
  0x8e   :  { %927 = vperm.xlu0 %1036, %v924_v32  }
  0x8f   :  { %v522_v35 = vpop.f32.mrf.mxu3 }
  0x90   :  { %v1420_v36 = vpop.permute.xlu0 %239  ;;  %v1422_v37 = vpop.permute.xlu1 %164  ;;  %993 = vmatmul.msk.f32.gmra.mxu0 %vm297_vm0, %v48_v34  ;;  %v523_v58 = vadd.f32 %v522_v35, %v265_v16 }
  0x91   :  { %v1425_v38 = vpop.f32.mrf.mxu1  ;;  %v235_v16 = vpop.permute.xlu2 %234 }
  0x92   :  { %v574_v62 = vmax.f32 %v523_v58, 0.0 }
  0x94   :  { %798 = vmatpush.msra.mxu2 %v574_v62 }
  0x95   :  { %v1427_v39 = vpop.f32.mrf.mxu0 }
  0x97   :  { %v1432_v41 = vpop.f32.mrf.mxu3 }
  0x98   :  { %v1434_v42 = vpop.permute.xlu1 %229  ;;  %v1436_v43 = vpop.permute.xlu0 %159  ;;  %994 = vmatmul.msk.f32.gmra.mxu0 %vm297_vm0, %v49_v40 }
  0x99   :  { %v1439_v44 = vpop.f32.mrf.mxu1 }
  0x9d   :  { %v1441_v45 = vpop.f32.mrf.mxu0 }
  0x9f   :  { %v1446_v47 = vpop.f32.mrf.mxu3 }
  0xa0   :  { %v1448_v48 = vpop.permute.xlu0 %224  ;;  %v150_v49 = vpop.permute.xlu1 %149  ;;  %995 = vmatmul.msk.f32.gmra.mxu0 %vm297_vm0, %v50_v46 }
  0xa1   :  { %v504_v50 = vpop.f32.mrf.mxu1 }
  0xa5   :  { %v1453_v52 = vpop.f32.mrf.mxu0 }
  0xa7   :  { %v531_v54 = vpop.f32.mrf.mxu3 }
  0xa8   :  { %v1458_v55 = vpop.permute.xlu1 %214  ;;  %v145_v56 = vpop.permute.xlu0 %144  ;;  %996 = vmatmul.msk.f32.gmra.mxu0 %vm297_vm0, %v51_v53 }
  0xa9   :  { %v507_v57 = vpop.f32.mrf.mxu1 }
  0xad   :  { %v1461_v60 = vpop.f32.mrf.mxu0 }
  0xaf   :  { %v534_v63 = vpop.f32.mrf.mxu3 }
  0xb0   :  { %v295_v0 = vpop.permute.xlu1 %294  ;;  %v1466_v1 = vpop.permute.xlu0 %209  ;;  %997 = vmatmul.msk.f32.gmra.mxu0 %vm297_vm0, %v52_v61 }
  0xb1   :  { %v510_v2 = vpop.f32.mrf.mxu1 }
  0xb2   :  { %v511_v61 = vadd.f32 %v510_v2, %v1408_v29 }
  0xb5   :  { %v1469_v3 = vpop.f32.mrf.mxu0 }
  0xb7   :  { %v537_v5 = vpop.f32.mrf.mxu3 }
  0xb8   :  { %v290_v6 = vpop.permute.xlu1 %289  ;;  %v1473_v7 = vpop.permute.xlu0 %204 }
  0xb9   :  { %v513_v8 = vpop.f32.mrf.mxu1  ;;  %v538_v11 = vadd.f32 %v537_v5, %v290_v6  ;;  %v505_v5 = vadd.f32 %v504_v50, %v235_v16  ;;  %v570_v6 = vmax.f32 %v511_v61, 0.0 }
  0xba   :  { %v514_v46 = vadd.f32 %v513_v8, %v250_v59  ;;  %v502_v59 = vadd.f32 %v1439_v44, %v1434_v42  ;;  %v499_v8 = vadd.f32 %v1425_v38, %v1448_v48 }
  0xbb   :  { %v579_v20 = vmax.f32 %v538_v11, 0.0 }
  0xbd   :  { %v450_v9 = vpop.f32.mrf.mxu0 }
  0xbe   :  { %v1475_v10 = vadd.f32 %v450_v9, %v145_v56  ;;  %v155_v56 = vpop.permute.xlu2 %154 }
  0xbf   :  { %v540_v12 = vpop.f32.mrf.mxu3 }
  0xc0   :  { %v285_v13 = vpop.permute.xlu1 %284  ;;  %v1477_v14 = vpop.permute.xlu0 %199  ;;  %v541_v15 = vadd.f32 %v540_v12, %v295_v0  ;;  %v508_v0 = vadd.f32 %v507_v57, %v1420_v36  ;;  %v568_v36 = vmax.f32 %v505_v5, 0.0  ;;  %v567_v12 = vmax.f32 %v502_v59, 0.0 }
  0xc1   :  { %v535_v18 = vadd.f32 %v534_v63, %v285_v13  ;;  %v516_v19 = vpop.f32.mrf.mxu1  ;;  %v566_v13 = vmax.f32 %v499_v8, 0.0 }
  0xc2   :  { %v580_v21 = vmax.f32 %v541_v15, 0.0  ;;  %v517_v28 = vadd.f32 %v516_v19, %v1391_v23  ;;  %v571_v23 = vmax.f32 %v514_v46, 0.0  ;;  %v569_v29 = vmax.f32 %v508_v0, 0.0 }
  0xc3   :  { %v578_v24 = vmax.f32 %v535_v18, 0.0 }
  0xc4   :  { %1014 = vmatpush.msk.msrb.mxu3 %vm738_vm1, %v580_v21  ;;  %v572_v62 = vmax.f32 %v517_v28, 0.0 }
  0xc5   :  { %v453_v25 = vpop.f32.mrf.mxu0 }
  0xc6   :  { %v1480_v26 = vadd.f32 %v453_v25, %v150_v49  ;;  %865 = vmatpush.msrb.mxu3 %v579_v20  ;;  %v220_v57 = vpop.permute.xlu2 %219 }
  0xc7   :  { %v496_v11 = vadd.f32 %v1413_v31, %v220_v57 }
  0xc8   :  { %v280_v32 = vpop.permute.xlu1 %279  ;;  %v1483_v34 = vpop.permute.xlu0 %194  ;;  %866 = vmatpush.msrb.mxu3 %v578_v24 }
  0xc9   :  { %v532_v35 = vadd.f32 %v531_v54, %v280_v32  ;;  %v519_v40 = vpop.f32.mrf.mxu1  ;;  %v565_v44 = vmax.f32 %v496_v11, 0.0 }
  0xca   :  { %v520_v53 = vadd.f32 %v519_v40, %v1389_v22 }
  0xcb   :  { %v577_v58 = vmax.f32 %v532_v35, 0.0 }
  0xcc   :  { %v573_v63 = vmax.f32 %v520_v53, 0.0 }
  0xcd   :  { %v456_v49 = vpop.f32.mrf.mxu0  ;;  %867 = vmatpush.msrb.mxu3 %v577_v58 }
  0xce   :  { %799 = vmatpush.msra.mxu2 %v573_v63  ;;  %v140_v38 = vpop.permute.xlu2 %139 }
  0xd0   :  { %v275_v9 = vpop.permute.xlu1 %274  ;;  %v1488_v54 = vpop.permute.xlu0 %189  ;;  %800 = vmatpush.msra.mxu2 %v572_v62 }
  0xd1   :  { %v529_v22 = vadd.f32 %v1446_v47, %v275_v9 }
  0xd2   :  { %801 = vmatpush.msra.mxu2 %v571_v23  ;;  %v448_v23 = vadd.f32 %v1469_v3, %v140_v38 }
  0xd3   :  { %v576_v2 = vmax.f32 %v529_v22, 0.0 }
  0xd4   :  { %802 = vmatpush.msra.mxu2 %v570_v6 }
  0xd5   :  { %v459_v50 = vpop.f32.mrf.mxu0  ;;  %868 = vmatpush.msrb.mxu3 %v576_v2 }
  0xd6   :  { %803 = vmatpush.msra.mxu2 %v569_v29  ;;  %v135_v18 = vpop.permute.xlu2 %134  ;;  %v460_v61 = vadd.f32 %v459_v50, %v1436_v43  ;;  %v550_v43 = vmax.f32 %v1475_v10, 0.0  ;;  %v584_v50 = vld [vmem:[%s1694_s3 + $0x18] sm:$0xff] }
  0xd7   :  { %v445_v5 = vadd.f32 %v1461_v60, %v135_v18 }
  0xd8   :  { %v270_v47 = vpop.permute.xlu0 %269  ;;  %804 = vmatpush.msra.mxu2 %v568_v36  ;;  %v583_v36 = vld [vmem:[%s1694_s3 + $0x10] sm:$0xff] }
  0xd9   :  { %v526_v42 = vadd.f32 %v1432_v41, %v270_v47  ;;  %v548_v9 = vmax.f32 %v445_v5, 0.0  ;;  %v606_v5 = vld [vmem:[%s1694_s3 + $0xc8] sm:$0xff] }
  0xda   :  { %805 = vmatpush.msra.mxu2 %v567_v12  ;;  %v589_v12 = vld [vmem:[%s1694_s3 + $0x40] sm:$0xff] }
  0xdb   :  { %v575_v15 = vmax.f32 %v526_v42, 0.0  ;;  %v587_v42 = vld [vmem:[%s1694_s3 + $0x30] sm:$0xff] }
  0xdc   :  { %806 = vmatpush.msra.mxu2 %v566_v13 }
  0xdd   :  { %v462_v16 = vpop.f32.mrf.mxu0  ;;  %869 = vmatpush.msrb.mxu3 %v575_v15 }
  0xde   :  { %807 = vmatpush.msra.mxu2 %v565_v44  ;;  %v130_v31 = vpop.permute.xlu2 %129  ;;  %v463_v46 = vadd.f32 %v462_v16, %v1422_v37  ;;  %v551_v37 = vmax.f32 %v1480_v26, 0.0  ;;  %v110_v26 = vpop.permute.xlu1 %109  ;;  %1015 = vmatmul.msk.f32.vlgmr.msrb.gmra.mxu3 %vm698_vm2, %v583_v36 }
  0xe5   :  { %v465_v48 = vpop.f32.mrf.mxu0 }
  0xe6   :  { %v125_v32 = vpop.permute.xlu2 %124  ;;  %v466_v35 = vadd.f32 %v465_v48, %v1471_v4 }
  0xe7   :  { %v439_v6 = vadd.f32 %v1441_v45, %v125_v32  ;;  %v599_v32 = vld [vmem:[%s1694_s3 + $0x90] sm:$0xff] }
  0xe8   :  { %v555_v62 = vmax.f32 %v466_v35, 0.0  ;;  %v591_v35 = vld [vmem:[%s1694_s3 + $0x50] sm:$0xff] }
  0xe9   :  { %v546_v2 = vmax.f32 %v439_v6, 0.0  ;;  %v612_v6 = vld [vmem:[%s1694_s3 + $0xf8] sm:$0xff] }
  0xed   :  { %v468_v19 = vpop.f32.mrf.mxu0 }
  0xee   :  { %v469_v41 = vadd.f32 %v468_v19, %v1410_v30  ;;  %v553_v30 = vmax.f32 %v460_v61, 0.0  ;;  %v120_v63 = vpop.permute.xlu2 %119  ;;  %v605_v61 = vld [vmem:[%s1694_s3 + $0xc0] sm:$0xff] }
  0xef   :  { %v436_v3 = vadd.f32 %v1427_v39, %v120_v63  ;;  %v581_v39 = vld [vmem:[%s1694_s3] sm:$0xff] }
  0xf0   :  { %v556_v53 = vmax.f32 %v469_v41, 0.0  ;;  %v588_v41 = vld [vmem:[%s1694_s3 + $0x38] sm:$0xff]  ;;  %v613_v63 = vld [vmem:[%s1694_s3 + $0x100] sm:$0xff] }
  0xf1   :  { %v545_v10 = vmax.f32 %v436_v3, 0.0 }
  0xf5   :  { %v471_v20 = vpop.f32.mrf.mxu0 }
  0xf6   :  { %v472_v24 = vadd.f32 %v471_v20, %v1451_v51  ;;  %v457_v51 = vadd.f32 %v456_v49, %v155_v56  ;;  %v442_v56 = vadd.f32 %v1453_v52, %v130_v31  ;;  %v549_v49 = vmax.f32 %v448_v23, 0.0  ;;  %v115_v22 = vpop.permute.xlu2 %114  ;;  %v582_v20 = vld [vmem:[%s1694_s3 + $0x8] sm:$0xff]  ;;  %v593_v31 = vld [vmem:[%s1694_s3 + $0x60] sm:$0xff]  ;;  %v616_v23 = vld [vmem:[%s1694_s3 + $0x118] sm:$0xff] }
  0xf7   :  { %v433_v60 = vadd.f32 %v1415_v33, %v115_v22  ;;  %v430_v52 = vadd.f32 %v1403_v27, %v110_v26  ;;  %v586_v33 = vld [vmem:[%s1694_s3 + $0x28] sm:$0xff]  ;;  %v1655_v26 = vpop.permute.xlu1 %685 }
  0xf8   :  { %v557_v40 = vmax.f32 %v472_v24, 0.0  ;;  %v552_v0 = vmax.f32 %v457_v51, 0.0  ;;  %v547_v29 = vmax.f32 %v442_v56, 0.0  ;;  %1016 = vmatmul.msk.f32.gmra.mxu3 %vm698_vm2, %v586_v33  ;;  %v598_v24 = vld [vmem:[%s1694_s3 + $0x88] sm:$0xff]  ;;  %v619_v56 = vld [vmem:[%s1694_s3 + $0x130] sm:$0xf] }
  0xf9   :  { %v544_v8 = vmax.f32 %v433_v60, 0.0  ;;  %v543_v57 = vmax.f32 %v430_v52, 0.0  ;;  %v610_v51 = vld [vmem:[%s1694_s3 + $0xe8] sm:$0xff]  ;;  %v691_v52 = vpop.permute.xlu0 %690 }
  0xfd   :  { %v474_v21 = vpop.f32.mrf.mxu0 }
  0xfe   :  { %v475_v25 = vadd.f32 %v474_v21, %v1374_v17  ;;  %v554_v17 = vmax.f32 %v463_v46, 0.0  ;;  %v585_v21 = vld [vmem:[%s1694_s3 + $0x20] sm:$0xff]  ;;  %v602_v46 = vld [vmem:[%s1694_s3 + $0xa8] sm:$0xff]  ;;  %v1648_v22 = vpop.permute.xlu2 %695 }
 0x100   :  { %v558_v28 = vmax.f32 %v475_v25, 0.0  ;;  %1017 = vmatmul.msk.f32.gmra.mxu3 %vm698_vm2, %v589_v12  ;;  %v596_v25 = vld [vmem:[%s1694_s3 + $0x78] sm:$0xff] }
 0x102   :  { %742 = vmatpush.msrb.mxu1 %v558_v28  ;;  %v601_v28 = vld [vmem:[%s1694_s3 + $0xa0] sm:$0xff] }
 0x104   :  { %743 = vmatpush.msrb.mxu1 %v557_v40  ;;  %v604_v40 = vld [vmem:[%s1694_s3 + $0xb8] sm:$0xff] }
 0x105   :  { %v1502_v58 = vpop.f32.mrf.mxu0 }
 0x106   :  { %744 = vmatpush.msrb.mxu1 %v556_v53  ;;  %v594_v53 = vld [vmem:[%s1694_s3 + $0x68] sm:$0xff] }
 0x108   :  { %745 = vmatpush.msrb.mxu1 %v555_v62  ;;  %v597_v62 = vld [vmem:[%s1694_s3 + $0x80] sm:$0xff] }
 0x10a   :  { %746 = vmatpush.msrb.mxu1 %v554_v17  ;;  %v608_v17 = vld [vmem:[%s1694_s3 + $0xd8] sm:$0xff] }
 0x10c   :  { %747 = vmatpush.msrb.mxu1 %v553_v30  ;;  %v600_v30 = vld [vmem:[%s1694_s3 + $0x98] sm:$0xff] }
 0x10d   :  { %v480_v4 = vpop.f32.mrf.mxu0 }
 0x10e   :  { %748 = vmatpush.msrb.mxu1 %v552_v0  ;;  %v481_v48 = vadd.f32 %v480_v4, %v1483_v34  ;;  %v611_v0 = vld [vmem:[%s1694_s3 + $0xf0] sm:$0xff] }
 0x10f   :  { %v603_v4 = vld [vmem:[%s1694_s3 + $0xb0] sm:$0xff] }
 0x110   :  { %749 = vmatpush.msrb.mxu1 %v551_v37  ;;  %v614_v37 = vld [vmem:[%s1694_s3 + $0x108] sm:$0xff] }
 0x112   :  { %750 = vmatpush.msrb.mxu1 %v550_v43  ;;  %v617_v43 = vld [vmem:[%s1694_s3 + $0x120] sm:$0xf] }
 0x114   :  { %751 = vmatpush.msrb.mxu1 %v549_v49  ;;  %v609_v49 = vld [vmem:[%s1694_s3 + $0xe0] sm:$0xff] }
 0x115   :  { %v483_v59 = vpop.f32.mrf.mxu0 }
 0x116   :  { %752 = vmatpush.msrb.mxu1 %v548_v9  ;;  %v484_v16 = vadd.f32 %v483_v59, %v1477_v14  ;;  %v560_v14 = vmax.f32 %v481_v48, 0.0  ;;  %v615_v9 = vld [vmem:[%s1694_s3 + $0x110] sm:$0xff]  ;;  %v618_v59 = vld [vmem:[%s1694_s3 + $0x128] sm:$0xf] }
 0x118   :  { %753 = vmatpush.msrb.mxu1 %v547_v29  ;;  %v561_v19 = vmax.f32 %v484_v16, 0.0  ;;  %v1653_v29 = vpop.permute.xlu2 %680 }
 0x11a   :  { %754 = vmatpush.msrb.mxu1 %v546_v2 }
 0x11c   :  { %755 = vmatpush.msrb.mxu1 %v545_v10 }
 0x11d   :  { %v486_v45 = vpop.f32.mrf.mxu0 }
 0x11e   :  { %756 = vmatpush.msrb.mxu1 %v544_v8  ;;  %v487_v44 = vadd.f32 %v486_v45, %v1473_v7  ;;  %v590_v7 = vld [vmem:[%s1694_s3 + $0x48] sm:$0xff]  ;;  %v1659_v8 = vpop.permute.xlu1 %670 }
 0x120   :  { %757 = vmatpush.msrb.mxu1 %v543_v57  ;;  %v562_v18 = vmax.f32 %v487_v44, 0.0  ;;  %v1657_v60 = vpop.permute.xlu2 %665 }
 0x121   :  { %758 = vmatmul.f32.vlgmr.msrb.gmra.mxu1 %v581_v39  ;;  %v1661_v39 = vpop.permute.xlu0 %675 }
 0x125   :  { %v489_v27 = vpop.f32.mrf.mxu0 }
 0x126   :  { %v490_v13 = vadd.f32 %v489_v27, %v1466_v1  ;;  %v478_v1 = vadd.f32 %v1502_v58, %v1488_v54  ;;  %v595_v54 = vld [vmem:[%s1694_s3 + $0x70] sm:$0xff]  ;;  %v656_v27 = vpop.permute.xlu1 %655 }
 0x127   :  { %v607_v58 = vld [vmem:[%s1694_s3 + $0xd0] sm:$0xff] }
 0x128   :  { %v563_v38 = vmax.f32 %v490_v13, 0.0  ;;  %v559_v34 = vmax.f32 %v478_v1, 0.0  ;;  %v651_v36 = vpop.permute.xlu2 %650 }
 0x129   :  { %761 = vmatmul.f32.gmra.mxu1 %v584_v50  ;;  %v661_v44 = vpop.permute.xlu0 %660 }
 0x12d   :  { %v492_v11 = vpop.f32.mrf.mxu0 }
 0x12e   :  { %v493_v47 = vadd.f32 %v492_v11, %v1458_v55  ;;  %v592_v55 = vld [vmem:[%s1694_s3 + $0x58] sm:$0xff] }
 0x12f   :  { %1018 = vmatmul.msk.f32.gmra.mxu3 %vm698_vm2, %v592_v55 }
 0x130   :  { %v564_v15 = vmax.f32 %v493_v47, 0.0  ;;  %v636_v50 = vpop.permute.xlu2 %635 }
 0x131   :  { %764 = vmatmul.f32.gmra.mxu1 %v587_v42 }
 0x132   :  { %808 = vmatpush.msra.mxu2 %v564_v15  ;;  %v641_v15 = vpop.permute.xlu1 %640 }
 0x134   :  { %809 = vmatpush.msra.mxu2 %v563_v38 }
 0x136   :  { %810 = vmatpush.msra.mxu2 %v562_v18 }
 0x137   :  { %1019 = vmatmul.msk.f32.gmra.mxu3 %vm698_vm2, %v595_v54 }
 0x138   :  { %811 = vmatpush.msra.mxu2 %v561_v19  ;;  %v646_v19 = vpop.permute.xlu0 %645 }
 0x139   :  { %767 = vmatmul.f32.gmra.mxu1 %v590_v7 }
 0x13a   :  { %812 = vmatpush.msra.mxu2 %v560_v14 }
 0x13c   :  { %813 = vmatpush.msra.mxu2 %v559_v34 }
 0x13d   :  { %814 = vmatmul.f32.vlgmr.msra.gmra.mxu2 %v582_v20 }
 0x13f   :  { %1020 = vmatmul.msk.f32.gmra.mxu3 %vm698_vm2, %v598_v24 }
 0x141   :  { %770 = vmatmul.f32.gmra.mxu1 %v593_v31 }
 0x145   :  { %817 = vmatmul.f32.gmra.mxu2 %v585_v21 }
 0x147   :  { %1021 = vmatmul.msk.f32.gmra.mxu3 %vm698_vm2, %v601_v28 }
 0x149   :  { %773 = vmatmul.f32.gmra.mxu1 %v596_v25 }
 0x14d   :  { %820 = vmatmul.f32.gmra.mxu2 %v588_v41 }
 0x14f   :  { %1022 = vmatmul.msk.f32.gmra.mxu3 %vm698_vm2, %v604_v40 }
 0x151   :  { %776 = vmatmul.f32.gmra.mxu1 %v599_v32 }
 0x155   :  { %823 = vmatmul.f32.gmra.mxu2 %v591_v35 }
 0x157   :  { %1023 = vmatmul.msk.f32.gmra.mxu3 %vm698_vm2, %v607_v58 }
 0x159   :  { %779 = vmatmul.f32.gmra.mxu1 %v602_v46 }
 0x15d   :  { %826 = vmatmul.f32.gmra.mxu2 %v594_v53 }
 0x15f   :  { %1024 = vmatmul.msk.f32.gmra.mxu3 %vm698_vm2, %v610_v51 }
 0x161   :  { %782 = vmatmul.f32.gmra.mxu1 %v605_v61  ;;  %v871_v2 = vpop.f32.mrf.mxu3 }
 0x165   :  { %829 = vmatmul.f32.gmra.mxu2 %v597_v62 }
 0x167   :  { %1025 = vmatmul.msk.f32.gmra.mxu3 %vm698_vm2, %v613_v63 }
 0x169   :  { %785 = vmatmul.f32.gmra.mxu1 %v608_v17 }
 0x16d   :  { %832 = vmatmul.f32.gmra.mxu2 %v600_v30 }
 0x16f   :  { %1026 = vmatmul.msk.f32.gmra.mxu3 %vm698_vm2, %v616_v23 }
 0x171   :  { %788 = vmatmul.f32.gmra.mxu1 %v611_v0 }
 0x175   :  { %835 = vmatmul.f32.gmra.mxu2 %v603_v4 }
 0x177   :  { %1027 = vmatmul.msk.f32.gmra.mxu3 %vm698_vm2, %v619_v56 }
 0x179   :  { %791 = vmatmul.f32.gmra.mxu1 %v614_v37 }
 0x17b   :  { %v874_v45 = vpop.f32.mrf.mxu3 }
 0x17d   :  { %838 = vmatmul.f32.gmra.mxu2 %v606_v5 }
 0x181   :  { %794 = vmatmul.f32.gmra.mxu1 %v617_v43 }
 0x183   :  { %v877_v33 = vpop.f32.mrf.mxu3 }
 0x185   :  { %841 = vmatmul.f32.gmra.mxu2 %v609_v49 }
 0x18d   :  { %844 = vmatmul.f32.gmra.mxu2 %v612_v6 }
 0x195   :  { %847 = vmatmul.f32.gmra.mxu2 %v615_v9 }
 0x19d   :  { %850 = vmatmul.f32.gmra.mxu2 %v618_v59 }
 0x19e   :  { %v759_v3 = vpop.f32.mrf.mxu1 }
 0x19f   :  { %v760_v11 = vadd.f32 %v759_v3, %v636_v50 }
 0x1a6   :  { %v762_v10 = vpop.f32.mrf.mxu1 }
 0x1a7   :  { %v763_v38 = vadd.f32 %v762_v10, %v641_v15 }
 0x1ae   :  { %v765_v57 = vpop.f32.mrf.mxu1 }
 0x1af   :  { %v766_v7 = vadd.f32 %v765_v57, %v646_v19 }
 0x1b2   :  { %v880_v16 = vpop.f32.mrf.mxu3 }
 0x1b6   :  { %v768_v47 = vpop.f32.mrf.mxu1 }
 0x1b7   :  { %v769_v21 = vadd.f32 %v768_v47, %v651_v36 }
 0x1ba   :  { %v883_v34 = vpop.f32.mrf.mxu3 }
 0x1be   :  { %v771_v1 = vpop.f32.mrf.mxu1 }
 0x1bf   :  { %v772_v32 = vadd.f32 %v771_v1, %v656_v27 }
 0x1c0   :  { %v815_v12 = vpop.f32.mrf.mxu2 }
 0x1c1   :  { %v816_v13 = vadd.f32 %v815_v12, %v760_v11 }
 0x1c2   :  { %v886_v41 = vpop.f32.mrf.mxu3 }
 0x1c3   :  { %v1663_v42 = vadd.f32 %v871_v2, %v816_v13 }
 0x1c6   :  { %v774_v31 = vpop.f32.mrf.mxu1 }
 0x1c7   :  { %v775_v61 = vadd.f32 %v774_v31, %v661_v44 }
 0x1c8   :  { %v818_v48 = vpop.f32.mrf.mxu2 }
 0x1c9   :  { %v819_v18 = vadd.f32 %v818_v48, %v763_v38 }
 0x1ca   :  { %v889_v58 = vpop.f32.mrf.mxu3 }
 0x1cb   :  { %v1665_v55 = vadd.f32 %v874_v45, %v819_v18 }
 0x1ce   :  { %v777_v35 = vpop.f32.mrf.mxu1 }
 0x1d0   :  { %v821_v14 = vpop.f32.mrf.mxu2 }
 0x1d1   :  { %v822_v20 = vadd.f32 %v821_v14, %v766_v7 }
 0x1d2   :  { %v892_v63 = vpop.f32.mrf.mxu3 }
 0x1d3   :  { %v1667_v54 = vadd.f32 %v877_v33, %v822_v20 }
 0x1d6   :  { %v780_v17 = vpop.f32.mrf.mxu1 }
 0x1d7   :  { %v781_v48 = vadd.f32 %v780_v17, %v1659_v8 }
 0x1d8   :  { %v824_v24 = vpop.f32.mrf.mxu2 }
 0x1d9   :  { %v825_v25 = vadd.f32 %v824_v24, %v769_v21 }
 0x1da   :  { %v895_v37 = vpop.f32.mrf.mxu3 }
 0x1db   :  { %v1669_v28 = vadd.f32 %v880_v16, %v825_v25 }
 0x1de   :  { %v783_v4 = vpop.f32.mrf.mxu1 }
 0x1df   :  { %v784_v44 = vadd.f32 %v783_v4, %v1661_v39 }
 0x1e0   :  { %v827_v40 = vpop.f32.mrf.mxu2 }
 0x1e1   :  { %v828_v46 = vadd.f32 %v827_v40, %v772_v32  ;;  %v912_v32 = vmax.f32 %v1667_v54, 0.0  ;;  %v910_v40 = vmax.f32 %v1663_v42, 0.0 }
 0x1e2   :  { %v898_v56 = vpop.f32.mrf.mxu3 }
 0x1e3   :  { %v1671_v53 = vadd.f32 %v883_v34, %v828_v46  ;;  %v923_v46 = vld [vmem:[%s1696_s5] sm:$0x1] }
 0x1e5   :  { %v914_v25 = vmax.f32 %v1671_v53, 0.0  ;;  %v928_v53 = vpop.permute.xlu0 %927 }
 0x1e6   :  { %v786_v5 = vpop.f32.mrf.mxu1  ;;  %v930_v54 = vperm.slane %v928_v53, 0 }
 0x1e7   :  { %v787_v12 = vadd.f32 %v786_v5, %v1653_v29 }
 0x1e8   :  { %v830_v62 = vpop.f32.mrf.mxu2 }
 0x1e9   :  { %v831_v51 = vadd.f32 %v830_v62, %v775_v61 }
 0x1ea   :  { %v901_v9 = vpop.f32.mrf.mxu3 }
 0x1eb   :  { %v887_v30 = vadd.f32 %v886_v41, %v831_v51  ;;  %v913_v41 = vmax.f32 %v1669_v28, 0.0 }
 0x1ee   :  { %v789_v49 = vpop.f32.mrf.mxu1 }
 0x1ef   :  { %v790_v57 = vadd.f32 %v789_v49, %v1655_v26  ;;  %v778_v26 = vadd.f32 %v777_v35, %v1657_v60  ;;  %v915_v60 = vmax.f32 %v887_v30, 0.0  ;;  %v911_v35 = vmax.f32 %v1665_v55, 0.0 }
 0x1f0   :  { %v833_v0 = vpop.f32.mrf.mxu2 }
 0x1f1   :  { %v834_v29 = vadd.f32 %v833_v0, %v778_v26 }
 0x1f2   :  { %v904_v2 = vpop.f32.mrf.mxu3 }
 0x1f3   :  { %v890_v31 = vadd.f32 %v889_v58, %v834_v29 }
 0x1f5   :  { %v916_v24 = vmax.f32 %v890_v31, 0.0 }
 0x1f6   :  { %v792_v3 = vpop.f32.mrf.mxu1 }
 0x1f7   :  { %v793_v36 = vadd.f32 %v792_v3, %v691_v52 }
 0x1f8   :  { %v836_v23 = vpop.f32.mrf.mxu2 }
 0x1fa   :  { %v907_v11 = vpop.f32.mrf.mxu3 }
 0x1fe   :  { %v795_v45 = vpop.f32.mrf.mxu1 }
 0x1ff   :  { %v796_v27 = vadd.f32 %v795_v45, %v1648_v22  ;;  %v837_v22 = vadd.f32 %v836_v23, %v781_v48 }
 0x200   :  { %v839_v43 = vpop.f32.mrf.mxu2 }
 0x201   :  { %v840_v18 = vadd.f32 %v839_v43, %v784_v44  ;;  %v893_v39 = vadd.f32 %v892_v63, %v837_v22 }
 0x203   :  { %v896_v14 = vadd.f32 %v895_v37, %v840_v18  ;;  %v917_v8 = vmax.f32 %v893_v39, 0.0 }
 0x205   :  { %v918_v21 = vmax.f32 %v896_v14, 0.0 }
 0x208   :  { %v842_v6 = vpop.f32.mrf.mxu2 }
 0x209   :  { %v843_v15 = vadd.f32 %v842_v6, %v787_v12 }
 0x20b   :  { %v899_v19 = vadd.f32 %v898_v56, %v843_v15 }
 0x20d   :  { %v919_v20 = vmax.f32 %v899_v19, 0.0 }
 0x210   :  { %v845_v59 = vpop.f32.mrf.mxu2 }
 0x211   :  { %v846_v13 = vadd.f32 %v845_v59, %v790_v57 }
 0x213   :  { %v902_v52 = vadd.f32 %v901_v9, %v846_v13 }
 0x215   :  { %v920_v34 = vmax.f32 %v902_v52, 0.0 }
 0x218   :  { %v848_v10 = vpop.f32.mrf.mxu2 }
 0x219   :  { %v849_v33 = vadd.f32 %v848_v10, %v793_v36 }
 0x21b   :  { %v905_v16 = vadd.f32 %v904_v2, %v849_v33 }
 0x21d   :  { %v921_v7 = vmax.f32 %v905_v16, 0.0 }
 0x220   :  { %v851_v50 = vpop.f32.mrf.mxu2 }
 0x221   :  { %v852_v47 = vadd.f32 %v851_v50, %v796_v27 }
 0x223   :  { %v908_v38 = vadd.f32 %v907_v11, %v852_v47 }
 0x225   :  { %v922_v1 = vmax.f32 %v908_v38, 0.0 }
 0x227   :  { %1028 = vmatpush.msk.msra.mxu3 %vm738_vm1, %v922_v1 }
 0x229   :  { %942 = vmatpush.msra.mxu3 %v921_v7 }
 0x22b   :  { %943 = vmatpush.msra.mxu3 %v920_v34 }
 0x22d   :  { %944 = vmatpush.msra.mxu3 %v919_v20 }
 0x22f   :  { %945 = vmatpush.msra.mxu3 %v918_v21 }
 0x231   :  { %946 = vmatpush.msra.mxu3 %v917_v8 }
 0x233   :  { %947 = vmatpush.msra.mxu3 %v916_v24 }
 0x235   :  { %948 = vmatpush.msra.mxu3 %v915_v60 }
 0x237   :  { %949 = vmatpush.msra.mxu3 %v914_v25 }
 0x239   :  { %950 = vmatpush.msra.mxu3 %v913_v41 }
 0x23b   :  { %951 = vmatpush.msra.mxu3 %v912_v32 }
 0x23d   :  { %952 = vmatpush.msra.mxu3 %v911_v35 }
 0x23f   :  { %953 = vmatpush.msra.mxu3 %v910_v40 }
 0x240   :  { %1029 = vmatmul.msk.f32.vlgmr.msra.gmra.mxu3 %vm931_vm3, %v923_v46 }
 0x2c3   :  { %v955_v55 = vpop.f32.mrf.mxu3 }
 0x2c4   :  { %v956_v28 = vadd.f32 %v955_v55, %v930_v54 }
 0x2c6   :  { %959 = vst.msk [vmem:[#allocation3] sm:$0x1] %vm958_vm4, %v956_v28 }
 0x2c7   :  { %970 = dma.vmem_to_hbm [thread:$0]  %s966_s26, 16, %s968_s29, [#allocation4]  }
 0x2c8   :  { %1063 = dma.done.wait [#allocation4], 16  }
 0x2c9   :  { %1064 = vsyncadd [#allocation4], 4294967280 }
 0x2ca   :  { %975 = vsyncpa [#allocation4], 1 }

</bundles_post_ra>
